<compile_context>
chip_gen: v5e
topology: v5e:2x2
jax: 0.10.0
libtpu: 0.0.40
codegen_flags: <defaults>
</compile_context>

<pallas_src>
import functools

import jax
import jax.numpy as jnp
from jax.experimental import pallas as pl
from jax.experimental.pallas import tpu as pltpu

X_DIM = 6
Y_DIM = 1
IN_DIM = X_DIM + Y_DIM      # 7
IN_PAD = 8                  # zero-padded K for the layer-1 matmul
H_DIM = 128
R_DIM = 5


def _encoder_kernel(xy_ref, w1_ref, b1_ref, w2_ref, b2_ref, w3_ref, b3_ref,
                    out_ref):
    """One batch tile of the fused 3-layer MLP.

    xy_ref  : (TB, IN_PAD)    bf16   [x | y | 0] batch tile
    w1_ref  : (IN_PAD, H_DIM) bf16   [W1x ; W1y ; 0]
    b1_ref  : (1, H_DIM)      f32
    w2_ref  : (H_DIM, H_DIM)  bf16
    b2_ref  : (1, H_DIM)      f32
    w3_ref  : (H_DIM, R_DIM)  bf16
    b3_ref  : (1, R_DIM)      f32
    out_ref : (TB, R_DIM)     f32
    """
    # Layer 1: relu(cat(x, y) @ W1 + b1) as a single K=8 bf16 MXU matmul
    # (the zero column of xy and zero row of W1 contribute nothing).
    h1 = jnp.dot(xy_ref[...], w1_ref[...], preferred_element_type=jnp.float32)
    h1 = jnp.maximum(h1 + b1_ref[...], 0.0)

    # Layer 2: relu(h1 @ W2 + b2).
    h2 = jnp.dot(h1.astype(jnp.bfloat16), w2_ref[...],
                 preferred_element_type=jnp.float32)
    h2 = jnp.maximum(h2 + b2_ref[...], 0.0)

    # Layer 3: h2 @ W3 + b3 (no activation).
    r = jnp.dot(h2.astype(jnp.bfloat16), w3_ref[...],
                preferred_element_type=jnp.float32)
    out_ref[...] = (r + b3_ref[...]).astype(out_ref.dtype)


def _round_up(n, m):
    return ((n + m - 1) // m) * m


@functools.partial(jax.jit, static_argnames=("tile_b",))
def deterministic_encoder(x, y, params, tile_b=2048):
    """x: (B, X_DIM), y: (B, Y_DIM) -> r: (B, R_DIM)."""
    B = x.shape[0]
    assert x.shape[1] == X_DIM and y.shape[1] == Y_DIM

    # Batch tile: large (default 2048) to amortize per-grid-step overhead, but
    # clamped so the parallel grid axis has >=2 balanced steps (v7x megacore)
    # and rounded to 16 rows (bf16 sublane packing). Small batches clamp down.
    tb = min(tile_b, _round_up(pl.cdiv(B, 2), 16))
    grid_n = int(pl.cdiv(B, tb))
    b_pad = grid_n * tb

    # Single packed bf16 input: [x | y | zero-pad] -> (b_pad, IN_PAD).
    xy = jnp.concatenate(
        [x.astype(jnp.float32), y.astype(jnp.float32)], axis=1)
    xy = jnp.pad(xy, ((0, b_pad - B), (0, IN_PAD - IN_DIM)))
    xy = xy.astype(jnp.bfloat16)

    # Weights cast once per call; W1 zero-padded to K=8. Biases stay f32.
    w1 = jnp.pad(params["w1"], ((0, IN_PAD - IN_DIM), (0, 0)))
    w1 = w1.astype(jnp.bfloat16)
    b1 = params["b1"].astype(jnp.float32)
    w2 = params["w2"].astype(jnp.bfloat16)
    b2 = params["b2"].astype(jnp.float32)
    w3 = params["w3"].astype(jnp.bfloat16)
    b3 = params["b3"].astype(jnp.float32)

    # Grid-invariant operands: constant block index -> VMEM-resident.
    full = lambda a: pl.BlockSpec(a.shape, lambda i: (0,) * a.ndim)

    # v5e's default scoped VMEM is 16 MiB; only tiles above ~2048 rows need a
    # higher cap (a limit, not a reservation, so harmless on v6e/v7x).
    vmem_limit = (40 * 1024 * 1024) if tb > 2048 else None

    out = pl.pallas_call(
        _encoder_kernel,
        out_shape=jax.ShapeDtypeStruct((b_pad, R_DIM), jnp.float32),
        grid_spec=pltpu.PrefetchScalarGridSpec(
            num_scalar_prefetch=0,
            grid=(grid_n,),
            in_specs=[
                pl.BlockSpec((tb, IN_PAD), lambda i: (i, 0)),  # packed xy tile
                full(w1), full(b1),
                full(w2), full(b2),
                full(w3), full(b3),
            ],
            out_specs=pl.BlockSpec((tb, R_DIM), lambda i: (i, 0)),
        ),
        compiler_params=pltpu.CompilerParams(
            dimension_semantics=("parallel",),
            vmem_limit_bytes=vmem_limit),
    )(xy, w1, b1, w2, b2, w3, b3)

    # Skip the slice (an extra HBM pass over the output) on the aligned path.
    return out if b_pad == B else out[:B]


def init_params(key):
    """nn.Linear-style init; weights pre-transposed to [in_features, out]."""
    k1, k2, k3, k4, k5, k6 = jax.random.split(key, 6)

    def uniform(k, shape, fan_in):
        bound = 1.0 / jnp.sqrt(fan_in)
        return jax.random.uniform(k, shape, jnp.float32, -bound, bound)

    return {
        "w1": uniform(k1, (IN_DIM, H_DIM), IN_DIM),
        "b1": uniform(k2, (1, H_DIM), IN_DIM),
        "w2": uniform(k3, (H_DIM, H_DIM), H_DIM),
        "b2": uniform(k4, (1, H_DIM), H_DIM),
        "w3": uniform(k5, (H_DIM, R_DIM), H_DIM),
        "b3": uniform(k6, (1, R_DIM), H_DIM),
    }


def _reference(x, y, p):
    """Pure f32 reference matching the PyTorch module."""
    inp = jnp.concatenate([x, y], axis=1)
    h1 = jnp.maximum(inp @ p["w1"] + p["b1"], 0.0)
    h2 = jnp.maximum(h1 @ p["w2"] + p["b2"], 0.0)
    return h2 @ p["w3"] + p["b3"]


if __name__ == "__main__":
    key = jax.random.PRNGKey(0)
    kp, kx, ky = jax.random.split(key, 3)

    B = 64  # small demo batch of (x_i, y_i) context pairs
    x = jax.random.normal(kx, (B, X_DIM), jnp.float32)
    y = jax.random.normal(ky, (B, Y_DIM), jnp.float32)
    params = init_params(kp)

    r = jax.block_until_ready(deterministic_encoder(x, y, params))
    r_ref = _reference(x, y, params)
    assert r.shape == (B, R_DIM), r.shape
    # bf16 MXU operands with f32 accumulation -> relaxed tolerance vs f32 ref.
    assert jnp.allclose(r, r_ref, atol=5e-2, rtol=5e-2), \
        float(jnp.max(jnp.abs(r - r_ref)))

    # Ragged batch (exercises the pad-and-slice path; no multiple-of-tile req).
    B2 = 50
    r2 = jax.block_until_ready(deterministic_encoder(x[:B2], y[:B2], params))
    assert r2.shape == (B2, R_DIM), r2.shape
    assert jnp.allclose(r2, r_ref[:B2], atol=5e-2, rtol=5e-2), \
        float(jnp.max(jnp.abs(r2 - r_ref[:B2])))

    print("KERNEL_OK")
</pallas_src>

<mosaic_0001>
module attributes {stable_mosaic.version = 11 : i64} {
  func.func @_encoder_kernel(%arg0: i32, %arg1: memref<32x8xbf16, #tpu.memory_space<vmem>>, %arg2: memref<8x128xbf16, #tpu.memory_space<vmem>>, %arg3: memref<1x128xf32, #tpu.memory_space<vmem>>, %arg4: memref<128x128xbf16, #tpu.memory_space<vmem>>, %arg5: memref<1x128xf32, #tpu.memory_space<vmem>>, %arg6: memref<128x5xbf16, #tpu.memory_space<vmem>>, %arg7: memref<1x5xf32, #tpu.memory_space<vmem>>, %arg8: memref<32x5xf32, #tpu.memory_space<vmem>>) attributes {dimension_semantics = [#tpu.dimension_semantics<parallel>], iteration_bounds = array<i64: 2>, scalar_prefetch = 0 : i64, scratch_operands = 0 : i64, tpu.core_type = #tpu.core_type<tc>, window_params = [{transform_indices = @transform_0, window_bounds = array<i64: 32, 8>}, {pipeline_mode = #tpu.pipeline_mode<synchronous>, transform_indices = @transform_1, window_bounds = array<i64: 8, 128>}, {pipeline_mode = #tpu.pipeline_mode<synchronous>, transform_indices = @transform_2, window_bounds = array<i64: 1, 128>}, {pipeline_mode = #tpu.pipeline_mode<synchronous>, transform_indices = @transform_3, window_bounds = array<i64: 128, 128>}, {pipeline_mode = #tpu.pipeline_mode<synchronous>, transform_indices = @transform_4, window_bounds = array<i64: 1, 128>}, {pipeline_mode = #tpu.pipeline_mode<synchronous>, transform_indices = @transform_5, window_bounds = array<i64: 128, 5>}, {pipeline_mode = #tpu.pipeline_mode<synchronous>, transform_indices = @transform_6, window_bounds = array<i64: 1, 5>}, {transform_indices = @transform_7, window_bounds = array<i64: 32, 5>}]} {
    %c0 = arith.constant 0 : index
    %c0_0 = arith.constant 0 : index
    %0 = vector.load %arg1[%c0, %c0_0] : memref<32x8xbf16, #tpu.memory_space<vmem>>, vector<32x8xbf16>
    %c0_1 = arith.constant 0 : index
    %c0_2 = arith.constant 0 : index
    %1 = vector.load %arg2[%c0_1, %c0_2] : memref<8x128xbf16, #tpu.memory_space<vmem>>, vector<8x128xbf16>
    %cst = arith.constant dense<0.000000e+00> : vector<32x128xf32>
    %2 = tpu.matmul %0, %1, %cst {dimension_numbers = #tpu.dot_dimension_numbers<[1], [0], [0], [1], [0, 0, 1, 1], [], []>} : vector<32x8xbf16>, vector<8x128xbf16>, vector<32x128xf32> -> vector<32x128xf32>
    %c0_3 = arith.constant 0 : index
    %c0_4 = arith.constant 0 : index
    %3 = vector.load %arg3[%c0_3, %c0_4] : memref<1x128xf32, #tpu.memory_space<vmem>>, vector<1x128xf32>
    %4 = vector.broadcast %3 : vector<1x128xf32> to vector<32x128xf32>
    %5 = arith.addf %2, %4 : vector<32x128xf32>
    %cst_5 = arith.constant 0.000000e+00 : f32
    %6 = vector.broadcast %cst_5 : f32 to vector<32x128xf32>
    %7 = arith.maximumf %5, %6 : vector<32x128xf32>
    %8 = arith.truncf %7 : vector<32x128xf32> to vector<32x128xbf16>
    %c0_6 = arith.constant 0 : index
    %c0_7 = arith.constant 0 : index
    %9 = vector.load %arg4[%c0_6, %c0_7] : memref<128x128xbf16, #tpu.memory_space<vmem>>, vector<128x128xbf16>
    %cst_8 = arith.constant dense<0.000000e+00> : vector<32x128xf32>
    %10 = tpu.matmul %8, %9, %cst_8 {dimension_numbers = #tpu.dot_dimension_numbers<[1], [0], [0], [1], [0, 0, 1, 1], [], []>} : vector<32x128xbf16>, vector<128x128xbf16>, vector<32x128xf32> -> vector<32x128xf32>
    %c0_9 = arith.constant 0 : index
    %c0_10 = arith.constant 0 : index
    %11 = vector.load %arg5[%c0_9, %c0_10] : memref<1x128xf32, #tpu.memory_space<vmem>>, vector<1x128xf32>
    %12 = vector.broadcast %11 : vector<1x128xf32> to vector<32x128xf32>
    %13 = arith.addf %10, %12 : vector<32x128xf32>
    %cst_11 = arith.constant 0.000000e+00 : f32
    %14 = vector.broadcast %cst_11 : f32 to vector<32x128xf32>
    %15 = arith.maximumf %13, %14 : vector<32x128xf32>
    %16 = arith.truncf %15 : vector<32x128xf32> to vector<32x128xbf16>
    %c0_12 = arith.constant 0 : index
    %c0_13 = arith.constant 0 : index
    %17 = vector.load %arg6[%c0_12, %c0_13] : memref<128x5xbf16, #tpu.memory_space<vmem>>, vector<128x5xbf16>
    %cst_14 = arith.constant dense<0.000000e+00> : vector<32x5xf32>
    %18 = tpu.matmul %16, %17, %cst_14 {dimension_numbers = #tpu.dot_dimension_numbers<[1], [0], [0], [1], [0, 0, 1, 1], [], []>} : vector<32x128xbf16>, vector<128x5xbf16>, vector<32x5xf32> -> vector<32x5xf32>
    %c0_15 = arith.constant 0 : index
    %c0_16 = arith.constant 0 : index
    %19 = vector.load %arg7[%c0_15, %c0_16] : memref<1x5xf32, #tpu.memory_space<vmem>>, vector<1x5xf32>
    %20 = vector.broadcast %19 : vector<1x5xf32> to vector<32x5xf32>
    %21 = arith.addf %18, %20 : vector<32x5xf32>
    %c0_17 = arith.constant 0 : index
    %c0_18 = arith.constant 0 : index
    %22 = vector.load %arg8[%c0_17, %c0_18] : memref<32x5xf32, #tpu.memory_space<vmem>>, vector<32x5xf32>
    tpu.vector_store %arg8[%c0_17, %c0_18], %21 {strides = array<i32>} : memref<32x5xf32, #tpu.memory_space<vmem>>, vector<32x5xf32>,
    return
  }
  func.func @transform_0(%arg0: i32) -> (i32, i32) {
    %c0_i32 = arith.constant 0 : i32
    %c0_i32_0 = arith.constant 0 : i32
    return %arg0, %c0_i32 : i32, i32
  }
  func.func @transform_1(%arg0: i32) -> (i32, i32) {
    %c0_i32 = arith.constant 0 : i32
    %c0_i32_0 = arith.constant 0 : i32
    %c0_i32_1 = arith.constant 0 : i32
    return %c0_i32, %c0_i32_0 : i32, i32
  }
  func.func @transform_2(%arg0: i32) -> (i32, i32) {
    %c0_i32 = arith.constant 0 : i32
    %c0_i32_0 = arith.constant 0 : i32
    %c0_i32_1 = arith.constant 0 : i32
    return %c0_i32, %c0_i32_0 : i32, i32
  }
  func.func @transform_3(%arg0: i32) -> (i32, i32) {
    %c0_i32 = arith.constant 0 : i32
    %c0_i32_0 = arith.constant 0 : i32
    %c0_i32_1 = arith.constant 0 : i32
    return %c0_i32, %c0_i32_0 : i32, i32
  }
  func.func @transform_4(%arg0: i32) -> (i32, i32) {
    %c0_i32 = arith.constant 0 : i32
    %c0_i32_0 = arith.constant 0 : i32
    %c0_i32_1 = arith.constant 0 : i32
    return %c0_i32, %c0_i32_0 : i32, i32
  }
  func.func @transform_5(%arg0: i32) -> (i32, i32) {
    %c0_i32 = arith.constant 0 : i32
    %c0_i32_0 = arith.constant 0 : i32
    %c0_i32_1 = arith.constant 0 : i32
    return %c0_i32, %c0_i32_0 : i32, i32
  }
  func.func @transform_6(%arg0: i32) -> (i32, i32) {
    %c0_i32 = arith.constant 0 : i32
    %c0_i32_0 = arith.constant 0 : i32
    %c0_i32_1 = arith.constant 0 : i32
    return %c0_i32, %c0_i32_0 : i32, i32
  }
  func.func @transform_7(%arg0: i32) -> (i32, i32) {
    %c0_i32 = arith.constant 0 : i32
    %c0_i32_0 = arith.constant 0 : i32
    return %arg0, %c0_i32 : i32, i32
  }
}

</mosaic_0001>

<bundles_post_ra>
// kernel: deterministic_encoder.1
= control target key start
LH: loop header
LB: loop body
LE: loop exit
PB: predicated region body
PF: predicated region fallthrough
CT: control target
= control target key end

     0   :  { %s757_s24 = smov 0   ;;  %s838_s0 = inlined_call_operand.vmem [shape: bf16[64,8], index: 0, kind: input, shape index: {}]   ;;  %s839_s1 = inlined_call_operand.vmem [shape: bf16[8,128], index: 1, kind: input, shape index: {}]   ;;  %s840_s2 = inlined_call_operand.vmem [shape: f32[1,128], index: 2, kind: input, shape index: {}]   ;;  %s841_s3 = inlined_call_operand.vmem [shape: bf16[128,128], index: 3, kind: input, shape index: {}]   ;;  %s842_s4 = inlined_call_operand.vmem [shape: f32[1,128], index: 4, kind: input, shape index: {}]   ;;  %s843_s5 = inlined_call_operand.vmem [shape: bf16[128,5], index: 5, kind: input, shape index: {}]   ;;  %s844_s6 = inlined_call_operand.vmem [shape: f32[1,5], index: 6, kind: input, shape index: {}]   ;;  %s845_s7 = inlined_call_operand.vmem [shape: f32[64,5], index: 7, kind: output, shape index: {}]  }
   0x1 LB: > { %s579_s25 = sadd.s32 4294967295, %s715_s24   ;;  %p583_p0 = scmp.ge.s32.totalorder %s715_s24, 1  ;;  %s715_s24 = sphi %s757_s24, %s17_s24  }
   0x2   : > { %p238_p1 = scmp.lt.s32.totalorder %s715_s24, 3 }
   0x4   : > { %p239_p2 = pnand %p583_p0, %p238_p1 }
   0x5   : > { %s584_s28 = sshll.u32 (!%p239_p2), %s579_s25, 2 }
   0x6   : > { %242 = sbr.rel (%p239_p2) target bundleno = 462 (0x1ce), region = 48  ;;  %p271_p3 = scmp.lt.s32.totalorder (!%p239_p2), %s584_s28, 7 }
   0xb   : > { %v287_v0 = vld [vmem:[%s839_s1] sm:$0xf]  ;;  %vm309_vm0 = vcmask 1043456   ;;  %v673_v1 = vld [vmem:[%s841_s3 + $0x38] sm:$0xff]  ;;  %v672_v3 = vld [vmem:[%s841_s3 + $0x30] sm:$0xff]  ;;  %s847_s28 = smov (!%p271_p3, %s584_s28), 7 }
   0xc   : > { %v311_v2 = vsel %vm309_vm0, %v287_v0, 0  ;;  %406 = vmatpush.bf16.msra.mxu1 %v673_v1  ;;  %682 = vmatpush.bf16.msra.mxu3 %v673_v1  ;;  %s585_s10 = sshll.u32 %s847_s28, 2  ;;  %vm302_vm1 = vcmask 64512   ;;  %v671_v4 = vld [vmem:[%s841_s3 + $0x28] sm:$0xff]  ;;  %v670_v6 = vld [vmem:[%s841_s3 + $0x20] sm:$0xff]  ;;  %v669_v8 = vld [vmem:[%s841_s3 + $0x18] sm:$0xff] }
   0xd   : > { %320 = vmatpush.bf16.msra.mxu0 %v311_v2  ;;  %s274_s13 = scalar_lea.vmem %s838_s0, %s585_s10  ;;  %v668_v9 = vld [vmem:[%s841_s3 + $0x10] sm:$0xff]  ;;  %v667_v10 = vld [vmem:[%s841_s3 + $0x8] sm:$0xff]  ;;  %v666_v11 = vld [vmem:[%s841_s3] sm:$0xff]  ;;  %s587_s26 = sshll.u32 %s847_s28, 3  ;;  %vm518_vm2 = vcmask 39936  }
   0xe   : > { %v664_v5 = vld [vmem:[%s274_s13] sm:$0xff]  ;;  %v665_v7 = vld [vmem:[%s274_s13 + $0x8] sm:$0xff]  ;;  %v681_v12 = vld [vmem:[%s843_s5 + $0x38] sm:$0xff]  ;;  %s280_s9 = scalar_lea.vmem %s845_s7, %s587_s26 }
   0xf   : > { %v680_v14 = vld [vmem:[%s843_s5 + $0x30] sm:$0xff]  ;;  %690 = vmatpush.bf16.msra.mxu2 %v681_v12  ;;  %v706_v15 = vld [vmem:[%s840_s2] ss:$0 sm:$0xff]  ;;  %v679_v16 = vld [vmem:[%s843_s5 + $0x28] sm:$0xff] }
  0x10   : > { %407 = vmatpush.bf16.msra.mxu1 %v672_v3  ;;  %683 = vmatpush.bf16.msra.mxu3 %v672_v3  ;;  %v678_v20 = vld [vmem:[%s843_s5 + $0x20] sm:$0xff]  ;;  %v677_v31 = vld [vmem:[%s843_s5 + $0x18] sm:$0xff]  ;;  %v676_v32 = vld [vmem:[%s843_s5 + $0x10] sm:$0xff] }
  0x11   : > { %596 = vmatmul.msk.bf16.vlgmr.msra.gmra.mxu0 %vm302_vm1, %v664_v5  ;;  %v675_v33 = vld [vmem:[%s843_s5 + $0x8] sm:$0xff]  ;;  %v674_v34 = vld [vmem:[%s843_s5] sm:$0xff] }
  0x12   : > { %499 = vmatpush.bf16.msrb.mxu0 %v681_v12  ;;  %v707_v36 = vld [vmem:[%s842_s4] ss:$0 sm:$0xff] }
  0x13   : > { %691 = vmatpush.bf16.msra.mxu2 %v680_v14  ;;  %v708_v50 = vld [vmem:[%s844_s6] ss:$0 sm:$0xff] }
  0x14   : > { %408 = vmatpush.bf16.msra.mxu1 %v671_v4  ;;  %684 = vmatpush.bf16.msra.mxu3 %v671_v4 }
  0x16   : > { %500 = vmatpush.bf16.msrb.mxu0 %v680_v14 }
  0x17   : > { %692 = vmatpush.bf16.msra.mxu2 %v679_v16 }
  0x18   : > { %409 = vmatpush.bf16.msra.mxu1 %v670_v6  ;;  %685 = vmatpush.bf16.msra.mxu3 %v670_v6 }
  0x1a   : > { %501 = vmatpush.bf16.msrb.mxu0 %v679_v16 }
  0x1b   : > { %693 = vmatpush.bf16.msra.mxu2 %v678_v20 }
  0x1c   : > { %410 = vmatpush.bf16.msra.mxu1 %v669_v8  ;;  %686 = vmatpush.bf16.msra.mxu3 %v669_v8 }
  0x1e   : > { %502 = vmatpush.bf16.msrb.mxu0 %v678_v20 }
  0x1f   : > { %694 = vmatpush.bf16.msra.mxu2 %v677_v31 }
  0x20   : > { %411 = vmatpush.bf16.msra.mxu1 %v668_v9  ;;  %687 = vmatpush.bf16.msra.mxu3 %v668_v9 }
  0x21   : > { %597 = vmatmul.msk.bf16.gmra.mxu0 %vm302_vm1, %v665_v7 }
  0x22   : > { %503 = vmatpush.bf16.msrb.mxu0 %v677_v31 }
  0x23   : > { %695 = vmatpush.bf16.msra.mxu2 %v676_v32 }
  0x24   : > { %412 = vmatpush.bf16.msra.mxu1 %v667_v10  ;;  %688 = vmatpush.bf16.msra.mxu3 %v667_v10 }
  0x26   : > { %504 = vmatpush.bf16.msrb.mxu0 %v676_v32 }
  0x27   : > { %696 = vmatpush.bf16.msra.mxu2 %v675_v33 }
  0x28   : > { %413 = vmatpush.bf16.msra.mxu1 %v666_v11  ;;  %689 = vmatpush.bf16.msra.mxu3 %v666_v11 }
  0x2a   : > { %505 = vmatpush.bf16.msrb.mxu0 %v675_v33 }
  0x2b   : > { %697 = vmatpush.bf16.msra.mxu2 %v674_v34 }
  0x2e   : > { %506 = vmatpush.bf16.msrb.mxu0 %v674_v34 }
  0x8e   : > { %v322_v13 = vpop.f32.mrf.mxu0 }
  0x8f   : > { %v323_v17 = vadd.f32 %v706_v15, %v322_v13 }
  0x91   : > { %v332_v21 = vmax.f32 %v323_v17, 0.0 }
  0x96   : > { %v324_v18 = vpop.f32.mrf.mxu0 }
  0x97   : > { %v325_v19 = vadd.f32 %v706_v15, %v324_v18 }
  0x99   : > { %v333_v22 = vmax.f32 %v325_v19, 0.0 }
  0x9b   : > { %v336_v23 = vpack.c.bf16 %v333_v22, %v332_v21 }
  0x9d   : > { %414 = vmatmul.bf16.vlgmr.msra.gmra.mxu1 %v336_v23 }
  0x9e   : > { %v327_v24 = vpop.f32.mrf.mxu0 }
  0x9f   : > { %v328_v25 = vadd.f32 %v706_v15, %v327_v24 }
  0xa1   : > { %v334_v28 = vmax.f32 %v328_v25, 0.0 }
  0xa6   : > { %v329_v26 = vpop.f32.mrf.mxu0 }
  0xa7   : > { %v330_v27 = vadd.f32 %v706_v15, %v329_v26 }
  0xa9   : > { %v335_v29 = vmax.f32 %v330_v27, 0.0 }
  0xab   : > { %v337_v30 = vpack.c.bf16 %v335_v29, %v334_v28 }
  0xad   : > { %419 = vmatmul.bf16.vlgmr.msra.gmra.mxu3 %v337_v30 }
 0x11a   : > { %v415_v35 = vpop.f32.mrf.mxu1 }
 0x11b   : > { %v416_v37 = vadd.f32 %v707_v36, %v415_v35 }
 0x11d   : > { %v425_v40 = vmax.f32 %v416_v37, 0.0 }
 0x122   : > { %v417_v38 = vpop.f32.mrf.mxu1 }
 0x123   : > { %v418_v39 = vadd.f32 %v707_v36, %v417_v38 }
 0x125   : > { %v426_v41 = vmax.f32 %v418_v39, 0.0 }
 0x127   : > { %v429_v42 = vpack.c.bf16 %v426_v41, %v425_v40 }
 0x129   : > { %507 = vmatmul.bf16.vlgmr.msrb.gmra.mxu0 %v429_v42 }
 0x130   : > { %v420_v43 = vpop.f32.mrf.mxu3 }
 0x131   : > { %v421_v44 = vadd.f32 %v707_v36, %v420_v43 }
 0x133   : > { %v427_v47 = vmax.f32 %v421_v44, 0.0 }
 0x138   : > { %v422_v45 = vpop.f32.mrf.mxu3 }
 0x139   : > { %v423_v46 = vadd.f32 %v707_v36, %v422_v45 }
 0x13b   : > { %v428_v48 = vmax.f32 %v423_v46, 0.0 }
 0x13d   : > { %v430_v49 = vpack.c.bf16 %v428_v48, %v427_v47 }
 0x13f   : > { %512 = vmatmul.bf16.vlgmr.msra.gmra.mxu2 %v430_v49 }
 0x1a6   : > { %v508_v51 = vpop.f32.mrf.mxu0 }
 0x1a7   : > { %v509_v52 = vadd.f32 %v708_v50, %v508_v51 }
 0x1a9   : > { %519 = vst.msk [vmem:[%s280_s9] sm:$0xff] %vm518_vm2, %v509_v52 }
 0x1ae   : > { %v510_v53 = vpop.f32.mrf.mxu0 }
 0x1af   : > { %v511_v54 = vadd.f32 %v708_v50, %v510_v53 }
 0x1b1   : > { %520 = vst.msk [vmem:[%s280_s9 + $0x8] sm:$0xff] %vm518_vm2, %v511_v54 }
 0x1c2   : > { %v513_v55 = vpop.f32.mrf.mxu2 }
 0x1c3   : > { %v514_v56 = vadd.f32 %v708_v50, %v513_v55 }
 0x1c5   : > { %521 = vst.msk [vmem:[%s280_s9 + $0x10] sm:$0xff] %vm518_vm2, %v514_v56 }
 0x1ca   : > { %v515_v57 = vpop.f32.mrf.mxu2 }
 0x1cb   : > { %v516_v58 = vadd.f32 %v708_v50, %v515_v57 }
 0x1cd   : > { %522 = vst.msk [vmem:[%s280_s9 + $0x18] sm:$0xff] %vm518_vm2, %v516_v58 }
 0x1ce PF: > { %s17_s24 = sadd.s32 1, %s715_s24  }
 0x1cf   : > { %p14_p4 = scmp.ge.s32.totalorder %s17_s24, 4  }
 0x1d1   :  { %16 = sbr.rel (!%p14_p4) target bundleno = 1 (0x1), region = 78 }

</bundles_post_ra>
